<compile_context>
chip_gen: v7x
topology: tpu7x:2x2x1
jax: 0.10.0
libtpu: 0.0.40
codegen_flags: <defaults>
</compile_context>

<pallas_src>
import math
import functools

import jax
import jax.numpy as jnp
from jax import lax
from jax.experimental import pallas as pl
from jax.experimental.pallas import tpu as pltpu


def mha_kernel(q_ref, k_ref, v_ref,
               wq_ref, bq_ref, wk_ref, bk_ref, wv_ref, bv_ref,
               wo_ref, bo_ref,
               out_ref, head_scratch,
               *, block_b, seq_len, num_heads, dim_q, dim_k, scale):
    # Flattened (block_b*seq_len, Din) activations; cast to bf16 so the MXU
    # runs bf16 x bf16 -> f32.  All softmax / bias math stays in f32.
    q = q_ref[...].astype(jnp.bfloat16)
    k = k_ref[...].astype(jnp.bfloat16)
    v = v_ref[...].astype(jnp.bfloat16)

    # Fused projections for ALL heads and ALL batch rows in the block:
    # three wide MXU matmuls with f32 accumulation.  1/sqrt(dq) is folded
    # into Q once here instead of scaling each (S,S) scores tensor.
    qp_all = ((jnp.dot(q, wq_ref[...], preferred_element_type=jnp.float32)
               + bq_ref[...]) * scale).astype(jnp.bfloat16)        # (Rt, H*Dq)
    kp_all = (jnp.dot(k, wk_ref[...], preferred_element_type=jnp.float32)
              + bk_ref[...]).astype(jnp.bfloat16)                  # (Rt, H*Dk)
    vp_all = (jnp.dot(v, wv_ref[...], preferred_element_type=jnp.float32)
              + bv_ref[...]).astype(jnp.bfloat16)                  # (Rt, H*Dk)

    # Per (batch element, head) scaled-dot-product attention.  Head outputs go
    # straight into the VMEM scratch slab at static offsets — no lane-axis
    # concat, no Python list keeping every head's intermediates live.
    for bi in range(block_b):
        r0 = bi * seq_len
        qp_b = qp_all[r0:r0 + seq_len, :]        # sublane slices (cheap)
        kp_b = kp_all[r0:r0 + seq_len, :]
        vp_b = vp_all[r0:r0 + seq_len, :]
        for h in range(num_heads):
            cq = h * dim_q
            ck = h * dim_k
            qp = qp_b[:, cq:cq + dim_q]          # (S, Dq)
            kp = kp_b[:, ck:ck + dim_k]          # (S, Dk)
            vp = vp_b[:, ck:ck + dim_k]          # (S, Dk)
            # qp @ kp.T without materializing a transpose: contract last dims.
            scores = lax.dot_general(qp, kp, (((1,), (1,)), ((), ())),
                                     preferred_element_type=jnp.float32)
            scores = scores - jnp.max(scores, axis=-1, keepdims=True)
            probs = jnp.exp(scores)
            probs = probs * pl.reciprocal(
                jnp.sum(probs, axis=-1, keepdims=True), approx=True)
            head_out = jnp.dot(probs.astype(jnp.bfloat16), vp,
                               preferred_element_type=jnp.float32)
            head_scratch[r0:r0 + seq_len, ck:ck + dim_k] = head_out

    # Concat-over-heads + output Linear == ONE wide matmul over the whole
    # block's rows; Dout is a multiple of 128 (lane-dense unmasked stores).
    out = jnp.dot(head_scratch[...].astype(jnp.bfloat16), wo_ref[...],
                  preferred_element_type=jnp.float32) + bo_ref[...]
    out_ref[...] = out.astype(out_ref.dtype)


def fuse_params(params, dim_in):
    """One-time fusion of per-head weights into wide, head-major MXU slabs.

    Hoisted out of the per-call hot path; weights are cast to bf16 once
    (halves resident VMEM + weight DMA bytes), biases stay f32.
    """
    Wq, bq, Wk, bk, Wv, bv, Wo, bo = params
    H, _, Dq = Wq.shape
    Dk = Wk.shape[-1]
    Dout = ((dim_in + 127) // 128) * 128   # lane-dense padded output width

    Wq_all = jnp.transpose(Wq, (1, 0, 2)).reshape(dim_in, H * Dq)
    Wk_all = jnp.transpose(Wk, (1, 0, 2)).reshape(dim_in, H * Dk)
    Wv_all = jnp.transpose(Wv, (1, 0, 2)).reshape(dim_in, H * Dk)
    Wo_all = Wo.reshape(H * Dk, dim_in)
    bo_all = bo.reshape(1, dim_in)
    if Dout != dim_in:
        Wo_all = jnp.pad(Wo_all, ((0, 0), (0, Dout - dim_in)))
        bo_all = jnp.pad(bo_all, ((0, 0), (0, Dout - dim_in)))

    return dict(
        Wq=Wq_all.astype(jnp.bfloat16), bq=bq.reshape(1, H * Dq),
        Wk=Wk_all.astype(jnp.bfloat16), bk=bk.reshape(1, H * Dk),
        Wv=Wv_all.astype(jnp.bfloat16), bv=bv.reshape(1, H * Dk),
        Wo=Wo_all.astype(jnp.bfloat16), bo=bo_all,
        num_heads=H, dim_q=Dq, dim_k=Dk, dim_in=dim_in, dim_out=Dout)


def _pick_block_b(batch, seq, target_rows=256):
    """Batch elements per grid step: target ~target_rows MXU rows per step,
    keep >=2 grid steps when possible (v7x dual TensorCore), prefer a divisor
    of `batch` so there is no padded tail block."""
    bt = max(1, min(target_rows // max(seq, 1), (batch + 1) // 2))
    bt = min(bt, batch)
    while batch % bt:
        bt -= 1
    if (bt * seq) % 8 and bt != batch:
        bt = batch   # full-extent block is always a legal block shape
    return bt


def multihead_attention(query, key, value, fused):
    """query/key/value: (B, S, dim_in) float32. Returns (B, S, dim_in)."""
    B, S, Din = query.shape
    H = fused["num_heads"]
    Dq = fused["dim_q"]
    Dk = fused["dim_k"]
    Dout = fused["dim_out"]

    Bt = _pick_block_b(B, S)
    Rt = Bt * S
    grid = (pl.cdiv(B, Bt),)

    # Flatten (B, S, Din) -> (B*S, Din): free major-dim reshape; each grid step
    # then runs Rt = Bt*S rows through the wide matmuls.
    qf = query.reshape(B * S, Din)
    kf = key.reshape(B * S, Din)
    vf = value.reshape(B * S, Din)

    kernel = functools.partial(
        mha_kernel, block_b=Bt, seq_len=S, num_heads=H, dim_q=Dq, dim_k=Dk,
        scale=1.0 / math.sqrt(Dq))

    row_spec = pl.BlockSpec((Rt, Din), lambda i: (i, 0))
    const = lambda i: (0, 0)   # weights/biases: fetched once, stay resident

    out = pl.pallas_call(
        kernel,
        out_shape=jax.ShapeDtypeStruct((B * S, Dout), query.dtype),
        grid_spec=pltpu.PrefetchScalarGridSpec(
            num_scalar_prefetch=0,
            grid=grid,
            in_specs=[
                row_spec, row_spec, row_spec,                 # q, k, v rows
                pl.BlockSpec((Din, H * Dq), const),           # Wq (bf16)
                pl.BlockSpec((1, H * Dq), const),             # bq (f32)
                pl.BlockSpec((Din, H * Dk), const),           # Wk (bf16)
                pl.BlockSpec((1, H * Dk), const),             # bk (f32)
                pl.BlockSpec((Din, H * Dk), const),           # Wv (bf16)
                pl.BlockSpec((1, H * Dk), const),             # bv (f32)
                pl.BlockSpec((H * Dk, Dout), const),          # Wo (bf16, padded)
                pl.BlockSpec((1, Dout), const),               # bo (f32, padded)
            ],
            out_specs=pl.BlockSpec((Rt, Dout), lambda i: (i, 0)),
            scratch_shapes=[pltpu.VMEM((Rt, H * Dk), jnp.float32)],
        ),
        compiler_params=pltpu.CompilerParams(
            dimension_semantics=("parallel",)),
    )(qf, kf, vf,
      fused["Wq"], fused["bq"], fused["Wk"], fused["bk"],
      fused["Wv"], fused["bv"], fused["Wo"], fused["bo"])

    out = out.reshape(B, S, Dout)
    return out[:, :, :Din] if Dout != Din else out


def make_params(key, num_heads, dim_in, dim_q, dim_k):
    """Deterministic nn.Linear-style init (uniform +/- 1/sqrt(fan_in))."""
    ks = jax.random.split(key, 8)
    u = lambda k, shape, fan_in: jax.random.uniform(
        k, shape, jnp.float32, -1.0 / math.sqrt(fan_in), 1.0 / math.sqrt(fan_in))
    Wq = u(ks[0], (num_heads, dim_in, dim_q), dim_in)
    bq = u(ks[1], (num_heads, 1, dim_q), dim_in)
    Wk = u(ks[2], (num_heads, dim_in, dim_k), dim_in)
    bk = u(ks[3], (num_heads, 1, dim_k), dim_in)
    Wv = u(ks[4], (num_heads, dim_in, dim_k), dim_in)
    bv = u(ks[5], (num_heads, 1, dim_k), dim_in)
    Wo = u(ks[6], (num_heads, dim_k, dim_in), num_heads * dim_k)
    bo = u(ks[7], (1, dim_in), num_heads * dim_k)
    return (Wq, bq, Wk, bk, Wv, bv, Wo, bo)


def reference_mha(query, key, value, params, *, dim_q):
    """Pure-JAX f32 reference mirroring the PyTorch module."""
    Wq, bq, Wk, bk, Wv, bv, Wo, bo = params
    qs = jnp.einsum("bsd,hdq->bhsq", query, Wq) + bq[None]   # (B,H,S,Dq)
    ks = jnp.einsum("bsd,hdk->bhsk", key, Wk) + bk[None]     # (B,H,S,Dk)
    vs = jnp.einsum("bsd,hdk->bhsk", value, Wv) + bv[None]   # (B,H,S,Dk)
    scores = jnp.einsum("bhqe,bhke->bhqk", qs, ks) / math.sqrt(dim_q)
    probs = jax.nn.softmax(scores, axis=-1)
    heads = jnp.einsum("bhqk,bhke->bhqe", probs, vs)         # (B,H,S,Dk)
    out = jnp.einsum("bhse,hed->bsd", heads, Wo) + bo[0]
    return out


if __name__ == "__main__":
    B, S, Din = 2, 8, 32
    H, Dq, Dk = 4, 16, 16

    key = jax.random.PRNGKey(0)
    k_q, k_k, k_v, k_p = jax.random.split(key, 4)
    query = jax.random.normal(k_q, (B, S, Din), jnp.float32)
    key_t = jax.random.normal(k_k, (B, S, Din), jnp.float32)
    value = jax.random.normal(k_v, (B, S, Din), jnp.float32)
    params = make_params(k_p, H, Din, Dq, Dk)

    fused = fuse_params(params, Din)          # one-time weight fusion (hoisted)
    out = multihead_attention(query, key_t, value, fused)
    out = jax.block_until_ready(out)

    ref = reference_mha(query, key_t, value, params, dim_q=Dq)
    assert out.shape == (B, S, Din)
    # bf16 MXU operands + approx (EUP vrcp) softmax reciprocal vs an exact-f32
    # reference -> tolerance loosened to 2e-2.
    assert jnp.allclose(out, ref, atol=2e-2, rtol=2e-2), "mismatch vs reference"

    print("KERNEL_OK")
</pallas_src>

<mosaic_0001>
module attributes {stable_mosaic.version = 11 : i64} {
  func.func @mha_kernel(%arg0: i32, %arg1: memref<8x32xf32, #tpu.memory_space<vmem>>, %arg2: memref<8x32xf32, #tpu.memory_space<vmem>>, %arg3: memref<8x32xf32, #tpu.memory_space<vmem>>, %arg4: memref<32x64xbf16, #tpu.memory_space<vmem>>, %arg5: memref<1x64xf32, #tpu.memory_space<vmem>>, %arg6: memref<32x64xbf16, #tpu.memory_space<vmem>>, %arg7: memref<1x64xf32, #tpu.memory_space<vmem>>, %arg8: memref<32x64xbf16, #tpu.memory_space<vmem>>, %arg9: memref<1x64xf32, #tpu.memory_space<vmem>>, %arg10: memref<64x128xbf16, #tpu.memory_space<vmem>>, %arg11: memref<1x128xf32, #tpu.memory_space<vmem>>, %arg12: memref<8x128xf32, #tpu.memory_space<vmem>>, %arg13: memref<8x64xf32, #tpu.memory_space<vmem>>) attributes {dimension_semantics = [#tpu.dimension_semantics<parallel>], iteration_bounds = array<i64: 2>, scalar_prefetch = 0 : i64, scratch_operands = 1 : i64, tpu.core_type = #tpu.core_type<tc>, window_params = [{transform_indices = @transform_0, window_bounds = array<i64: 8, 32>}, {transform_indices = @transform_1, window_bounds = array<i64: 8, 32>}, {transform_indices = @transform_2, window_bounds = array<i64: 8, 32>}, {pipeline_mode = #tpu.pipeline_mode<synchronous>, transform_indices = @transform_3, window_bounds = array<i64: 32, 64>}, {pipeline_mode = #tpu.pipeline_mode<synchronous>, transform_indices = @transform_4, window_bounds = array<i64: 1, 64>}, {pipeline_mode = #tpu.pipeline_mode<synchronous>, transform_indices = @transform_5, window_bounds = array<i64: 32, 64>}, {pipeline_mode = #tpu.pipeline_mode<synchronous>, transform_indices = @transform_6, window_bounds = array<i64: 1, 64>}, {pipeline_mode = #tpu.pipeline_mode<synchronous>, transform_indices = @transform_7, window_bounds = array<i64: 32, 64>}, {pipeline_mode = #tpu.pipeline_mode<synchronous>, transform_indices = @transform_8, window_bounds = array<i64: 1, 64>}, {pipeline_mode = #tpu.pipeline_mode<synchronous>, transform_indices = @transform_9, window_bounds = array<i64: 64, 128>}, {pipeline_mode = #tpu.pipeline_mode<synchronous>, transform_indices = @transform_10, window_bounds = array<i64: 1, 128>}, {transform_indices = @transform_11, window_bounds = array<i64: 8, 128>}]} {
    %c0 = arith.constant 0 : index
    %c0_0 = arith.constant 0 : index
    %0 = vector.load %arg1[%c0, %c0_0] : memref<8x32xf32, #tpu.memory_space<vmem>>, vector<8x32xf32>
    %1 = arith.truncf %0 : vector<8x32xf32> to vector<8x32xbf16>
    %c0_1 = arith.constant 0 : index
    %c0_2 = arith.constant 0 : index
    %2 = vector.load %arg2[%c0_1, %c0_2] : memref<8x32xf32, #tpu.memory_space<vmem>>, vector<8x32xf32>
    %3 = arith.truncf %2 : vector<8x32xf32> to vector<8x32xbf16>
    %c0_3 = arith.constant 0 : index
    %c0_4 = arith.constant 0 : index
    %4 = vector.load %arg3[%c0_3, %c0_4] : memref<8x32xf32, #tpu.memory_space<vmem>>, vector<8x32xf32>
    %5 = arith.truncf %4 : vector<8x32xf32> to vector<8x32xbf16>
    %c0_5 = arith.constant 0 : index
    %c0_6 = arith.constant 0 : index
    %6 = vector.load %arg4[%c0_5, %c0_6] : memref<32x64xbf16, #tpu.memory_space<vmem>>, vector<32x64xbf16>
    %cst = arith.constant dense<0.000000e+00> : vector<8x64xf32>
    %7 = tpu.matmul %1, %6, %cst {dimension_numbers = #tpu.dot_dimension_numbers<[1], [0], [0], [1], [0, 0, 1, 1], [], []>} : vector<8x32xbf16>, vector<32x64xbf16>, vector<8x64xf32> -> vector<8x64xf32>
    %c0_7 = arith.constant 0 : index
    %c0_8 = arith.constant 0 : index
    %8 = vector.load %arg5[%c0_7, %c0_8] : memref<1x64xf32, #tpu.memory_space<vmem>>, vector<1x64xf32>
    %9 = vector.broadcast %8 : vector<1x64xf32> to vector<8x64xf32>
    %10 = arith.addf %7, %9 : vector<8x64xf32>
    %cst_9 = arith.constant 2.500000e-01 : f32
    %11 = vector.broadcast %cst_9 : f32 to vector<8x64xf32>
    %12 = arith.mulf %10, %11 : vector<8x64xf32>
    %13 = arith.truncf %12 : vector<8x64xf32> to vector<8x64xbf16>
    %c0_10 = arith.constant 0 : index
    %c0_11 = arith.constant 0 : index
    %14 = vector.load %arg6[%c0_10, %c0_11] : memref<32x64xbf16, #tpu.memory_space<vmem>>, vector<32x64xbf16>
    %cst_12 = arith.constant dense<0.000000e+00> : vector<8x64xf32>
    %15 = tpu.matmul %3, %14, %cst_12 {dimension_numbers = #tpu.dot_dimension_numbers<[1], [0], [0], [1], [0, 0, 1, 1], [], []>} : vector<8x32xbf16>, vector<32x64xbf16>, vector<8x64xf32> -> vector<8x64xf32>
    %c0_13 = arith.constant 0 : index
    %c0_14 = arith.constant 0 : index
    %16 = vector.load %arg7[%c0_13, %c0_14] : memref<1x64xf32, #tpu.memory_space<vmem>>, vector<1x64xf32>
    %17 = vector.broadcast %16 : vector<1x64xf32> to vector<8x64xf32>
    %18 = arith.addf %15, %17 : vector<8x64xf32>
    %19 = arith.truncf %18 : vector<8x64xf32> to vector<8x64xbf16>
    %c0_15 = arith.constant 0 : index
    %c0_16 = arith.constant 0 : index
    %20 = vector.load %arg8[%c0_15, %c0_16] : memref<32x64xbf16, #tpu.memory_space<vmem>>, vector<32x64xbf16>
    %cst_17 = arith.constant dense<0.000000e+00> : vector<8x64xf32>
    %21 = tpu.matmul %5, %20, %cst_17 {dimension_numbers = #tpu.dot_dimension_numbers<[1], [0], [0], [1], [0, 0, 1, 1], [], []>} : vector<8x32xbf16>, vector<32x64xbf16>, vector<8x64xf32> -> vector<8x64xf32>
    %c0_18 = arith.constant 0 : index
    %c0_19 = arith.constant 0 : index
    %22 = vector.load %arg9[%c0_18, %c0_19] : memref<1x64xf32, #tpu.memory_space<vmem>>, vector<1x64xf32>
    %23 = vector.broadcast %22 : vector<1x64xf32> to vector<8x64xf32>
    %24 = arith.addf %21, %23 : vector<8x64xf32>
    %25 = arith.truncf %24 : vector<8x64xf32> to vector<8x64xbf16>
    %26 = vector.extract_strided_slice %13 {offsets = [0, 0], sizes = [8, 16], strides = [1, 1]} : vector<8x64xbf16> to vector<8x16xbf16>
    %27 = vector.extract_strided_slice %19 {offsets = [0, 0], sizes = [8, 16], strides = [1, 1]} : vector<8x64xbf16> to vector<8x16xbf16>
    %28 = vector.extract_strided_slice %25 {offsets = [0, 0], sizes = [8, 16], strides = [1, 1]} : vector<8x64xbf16> to vector<8x16xbf16>
    %cst_20 = arith.constant dense<0.000000e+00> : vector<8x8xf32>
    %29 = tpu.matmul %26, %27, %cst_20 {dimension_numbers = #tpu.dot_dimension_numbers<[1], [1], [0], [0], [0, 0, 1, 0], [], []>} : vector<8x16xbf16>, vector<8x16xbf16>, vector<8x8xf32> -> vector<8x8xf32>
    %cst_21 = arith.constant dense<0xFF800000> : vector<8xf32>
    %30 = vector.multi_reduction <maximumf>, %29, %cst_21 [1] : vector<8x8xf32> to vector<8xf32>
    %31 = vector.shape_cast %30 : vector<8xf32> to vector<8x1xf32>
    %32 = vector.broadcast %31 : vector<8x1xf32> to vector<8x8xf32>
    %33 = arith.subf %29, %32 : vector<8x8xf32>
    %34 = math.exp %33 : vector<8x8xf32>
    %cst_22 = arith.constant dense<0.000000e+00> : vector<8xf32>
    %35 = vector.multi_reduction <add>, %34, %cst_22 [1] : vector<8x8xf32> to vector<8xf32>
    %36 = vector.shape_cast %35 : vector<8xf32> to vector<8x1xf32>
    %37 = tpu.reciprocal %36 {approx = true} : vector<8x1xf32> -> vector<8x1xf32>
    %38 = vector.broadcast %37 : vector<8x1xf32> to vector<8x8xf32>
    %39 = arith.mulf %34, %38 : vector<8x8xf32>
    %40 = arith.truncf %39 : vector<8x8xf32> to vector<8x8xbf16>
    %cst_23 = arith.constant dense<0.000000e+00> : vector<8x16xf32>
    %41 = tpu.matmul %40, %28, %cst_23 {dimension_numbers = #tpu.dot_dimension_numbers<[1], [0], [0], [1], [0, 0, 1, 1], [], []>} : vector<8x8xbf16>, vector<8x16xbf16>, vector<8x16xf32> -> vector<8x16xf32>
    %c0_24 = arith.constant 0 : index
    %c0_25 = arith.constant 0 : index
    %42 = vector.load %arg13[%c0_24, %c0_25] : memref<8x64xf32, #tpu.memory_space<vmem>>, vector<8x16xf32>
    tpu.vector_store %arg13[%c0_24, %c0_25], %41 {strides = array<i32>} : memref<8x64xf32, #tpu.memory_space<vmem>>, vector<8x16xf32>,
    %43 = vector.extract_strided_slice %13 {offsets = [0, 16], sizes = [8, 16], strides = [1, 1]} : vector<8x64xbf16> to vector<8x16xbf16>
    %44 = vector.extract_strided_slice %19 {offsets = [0, 16], sizes = [8, 16], strides = [1, 1]} : vector<8x64xbf16> to vector<8x16xbf16>
    %45 = vector.extract_strided_slice %25 {offsets = [0, 16], sizes = [8, 16], strides = [1, 1]} : vector<8x64xbf16> to vector<8x16xbf16>
    %cst_26 = arith.constant dense<0.000000e+00> : vector<8x8xf32>
    %46 = tpu.matmul %43, %44, %cst_26 {dimension_numbers = #tpu.dot_dimension_numbers<[1], [1], [0], [0], [0, 0, 1, 0], [], []>} : vector<8x16xbf16>, vector<8x16xbf16>, vector<8x8xf32> -> vector<8x8xf32>
    %cst_27 = arith.constant dense<0xFF800000> : vector<8xf32>
    %47 = vector.multi_reduction <maximumf>, %46, %cst_27 [1] : vector<8x8xf32> to vector<8xf32>
    %48 = vector.shape_cast %47 : vector<8xf32> to vector<8x1xf32>
    %49 = vector.broadcast %48 : vector<8x1xf32> to vector<8x8xf32>
    %50 = arith.subf %46, %49 : vector<8x8xf32>
    %51 = math.exp %50 : vector<8x8xf32>
    %cst_28 = arith.constant dense<0.000000e+00> : vector<8xf32>
    %52 = vector.multi_reduction <add>, %51, %cst_28 [1] : vector<8x8xf32> to vector<8xf32>
    %53 = vector.shape_cast %52 : vector<8xf32> to vector<8x1xf32>
    %54 = tpu.reciprocal %53 {approx = true} : vector<8x1xf32> -> vector<8x1xf32>
    %55 = vector.broadcast %54 : vector<8x1xf32> to vector<8x8xf32>
    %56 = arith.mulf %51, %55 : vector<8x8xf32>
    %57 = arith.truncf %56 : vector<8x8xf32> to vector<8x8xbf16>
    %cst_29 = arith.constant dense<0.000000e+00> : vector<8x16xf32>
    %58 = tpu.matmul %57, %45, %cst_29 {dimension_numbers = #tpu.dot_dimension_numbers<[1], [0], [0], [1], [0, 0, 1, 1], [], []>} : vector<8x8xbf16>, vector<8x16xbf16>, vector<8x16xf32> -> vector<8x16xf32>
    %c0_30 = arith.constant 0 : index
    %c16 = arith.constant 16 : index
    %59 = vector.load %arg13[%c0_30, %c16] : memref<8x64xf32, #tpu.memory_space<vmem>>, vector<8x16xf32>
    tpu.vector_store %arg13[%c0_30, %c16], %58 {strides = array<i32>} : memref<8x64xf32, #tpu.memory_space<vmem>>, vector<8x16xf32>,
    %60 = vector.extract_strided_slice %13 {offsets = [0, 32], sizes = [8, 16], strides = [1, 1]} : vector<8x64xbf16> to vector<8x16xbf16>
    %61 = vector.extract_strided_slice %19 {offsets = [0, 32], sizes = [8, 16], strides = [1, 1]} : vector<8x64xbf16> to vector<8x16xbf16>
    %62 = vector.extract_strided_slice %25 {offsets = [0, 32], sizes = [8, 16], strides = [1, 1]} : vector<8x64xbf16> to vector<8x16xbf16>
    %cst_31 = arith.constant dense<0.000000e+00> : vector<8x8xf32>
    %63 = tpu.matmul %60, %61, %cst_31 {dimension_numbers = #tpu.dot_dimension_numbers<[1], [1], [0], [0], [0, 0, 1, 0], [], []>} : vector<8x16xbf16>, vector<8x16xbf16>, vector<8x8xf32> -> vector<8x8xf32>
    %cst_32 = arith.constant dense<0xFF800000> : vector<8xf32>
    %64 = vector.multi_reduction <maximumf>, %63, %cst_32 [1] : vector<8x8xf32> to vector<8xf32>
    %65 = vector.shape_cast %64 : vector<8xf32> to vector<8x1xf32>
    %66 = vector.broadcast %65 : vector<8x1xf32> to vector<8x8xf32>
    %67 = arith.subf %63, %66 : vector<8x8xf32>
    %68 = math.exp %67 : vector<8x8xf32>
    %cst_33 = arith.constant dense<0.000000e+00> : vector<8xf32>
    %69 = vector.multi_reduction <add>, %68, %cst_33 [1] : vector<8x8xf32> to vector<8xf32>
    %70 = vector.shape_cast %69 : vector<8xf32> to vector<8x1xf32>
    %71 = tpu.reciprocal %70 {approx = true} : vector<8x1xf32> -> vector<8x1xf32>
    %72 = vector.broadcast %71 : vector<8x1xf32> to vector<8x8xf32>
    %73 = arith.mulf %68, %72 : vector<8x8xf32>
    %74 = arith.truncf %73 : vector<8x8xf32> to vector<8x8xbf16>
    %cst_34 = arith.constant dense<0.000000e+00> : vector<8x16xf32>
    %75 = tpu.matmul %74, %62, %cst_34 {dimension_numbers = #tpu.dot_dimension_numbers<[1], [0], [0], [1], [0, 0, 1, 1], [], []>} : vector<8x8xbf16>, vector<8x16xbf16>, vector<8x16xf32> -> vector<8x16xf32>
    %c0_35 = arith.constant 0 : index
    %c32 = arith.constant 32 : index
    %76 = vector.load %arg13[%c0_35, %c32] : memref<8x64xf32, #tpu.memory_space<vmem>>, vector<8x16xf32>
    tpu.vector_store %arg13[%c0_35, %c32], %75 {strides = array<i32>} : memref<8x64xf32, #tpu.memory_space<vmem>>, vector<8x16xf32>,
    %77 = vector.extract_strided_slice %13 {offsets = [0, 48], sizes = [8, 16], strides = [1, 1]} : vector<8x64xbf16> to vector<8x16xbf16>
    %78 = vector.extract_strided_slice %19 {offsets = [0, 48], sizes = [8, 16], strides = [1, 1]} : vector<8x64xbf16> to vector<8x16xbf16>
    %79 = vector.extract_strided_slice %25 {offsets = [0, 48], sizes = [8, 16], strides = [1, 1]} : vector<8x64xbf16> to vector<8x16xbf16>
    %cst_36 = arith.constant dense<0.000000e+00> : vector<8x8xf32>
    %80 = tpu.matmul %77, %78, %cst_36 {dimension_numbers = #tpu.dot_dimension_numbers<[1], [1], [0], [0], [0, 0, 1, 0], [], []>} : vector<8x16xbf16>, vector<8x16xbf16>, vector<8x8xf32> -> vector<8x8xf32>
    %cst_37 = arith.constant dense<0xFF800000> : vector<8xf32>
    %81 = vector.multi_reduction <maximumf>, %80, %cst_37 [1] : vector<8x8xf32> to vector<8xf32>
    %82 = vector.shape_cast %81 : vector<8xf32> to vector<8x1xf32>
    %83 = vector.broadcast %82 : vector<8x1xf32> to vector<8x8xf32>
    %84 = arith.subf %80, %83 : vector<8x8xf32>
    %85 = math.exp %84 : vector<8x8xf32>
    %cst_38 = arith.constant dense<0.000000e+00> : vector<8xf32>
    %86 = vector.multi_reduction <add>, %85, %cst_38 [1] : vector<8x8xf32> to vector<8xf32>
    %87 = vector.shape_cast %86 : vector<8xf32> to vector<8x1xf32>
    %88 = tpu.reciprocal %87 {approx = true} : vector<8x1xf32> -> vector<8x1xf32>
    %89 = vector.broadcast %88 : vector<8x1xf32> to vector<8x8xf32>
    %90 = arith.mulf %85, %89 : vector<8x8xf32>
    %91 = arith.truncf %90 : vector<8x8xf32> to vector<8x8xbf16>
    %cst_39 = arith.constant dense<0.000000e+00> : vector<8x16xf32>
    %92 = tpu.matmul %91, %79, %cst_39 {dimension_numbers = #tpu.dot_dimension_numbers<[1], [0], [0], [1], [0, 0, 1, 1], [], []>} : vector<8x8xbf16>, vector<8x16xbf16>, vector<8x16xf32> -> vector<8x16xf32>
    %c0_40 = arith.constant 0 : index
    %c48 = arith.constant 48 : index
    %93 = vector.load %arg13[%c0_40, %c48] : memref<8x64xf32, #tpu.memory_space<vmem>>, vector<8x16xf32>
    tpu.vector_store %arg13[%c0_40, %c48], %92 {strides = array<i32>} : memref<8x64xf32, #tpu.memory_space<vmem>>, vector<8x16xf32>,
    %c0_41 = arith.constant 0 : index
    %c0_42 = arith.constant 0 : index
    %94 = vector.load %arg13[%c0_41, %c0_42] : memref<8x64xf32, #tpu.memory_space<vmem>>, vector<8x64xf32>
    %95 = arith.truncf %94 : vector<8x64xf32> to vector<8x64xbf16>
    %c0_43 = arith.constant 0 : index
    %c0_44 = arith.constant 0 : index
    %96 = vector.load %arg10[%c0_43, %c0_44] : memref<64x128xbf16, #tpu.memory_space<vmem>>, vector<64x128xbf16>
    %cst_45 = arith.constant dense<0.000000e+00> : vector<8x128xf32>
    %97 = tpu.matmul %95, %96, %cst_45 {dimension_numbers = #tpu.dot_dimension_numbers<[1], [0], [0], [1], [0, 0, 1, 1], [], []>} : vector<8x64xbf16>, vector<64x128xbf16>, vector<8x128xf32> -> vector<8x128xf32>
    %c0_46 = arith.constant 0 : index
    %c0_47 = arith.constant 0 : index
    %98 = vector.load %arg11[%c0_46, %c0_47] : memref<1x128xf32, #tpu.memory_space<vmem>>, vector<1x128xf32>
    %99 = vector.broadcast %98 : vector<1x128xf32> to vector<8x128xf32>
    %100 = arith.addf %97, %99 : vector<8x128xf32>
    %c0_48 = arith.constant 0 : index
    %c0_49 = arith.constant 0 : index
    %101 = vector.load %arg12[%c0_48, %c0_49] : memref<8x128xf32, #tpu.memory_space<vmem>>, vector<8x128xf32>
    tpu.vector_store %arg12[%c0_48, %c0_49], %100 {strides = array<i32>} : memref<8x128xf32, #tpu.memory_space<vmem>>, vector<8x128xf32>,
    return
  }
  func.func @transform_0(%arg0: i32) -> (i32, i32) {
    %c0_i32 = arith.constant 0 : i32
    %c0_i32_0 = arith.constant 0 : i32
    return %arg0, %c0_i32 : i32, i32
  }
  func.func @transform_1(%arg0: i32) -> (i32, i32) {
    %c0_i32 = arith.constant 0 : i32
    %c0_i32_0 = arith.constant 0 : i32
    return %arg0, %c0_i32 : i32, i32
  }
  func.func @transform_2(%arg0: i32) -> (i32, i32) {
    %c0_i32 = arith.constant 0 : i32
    %c0_i32_0 = arith.constant 0 : i32
    return %arg0, %c0_i32 : i32, i32
  }
  func.func @transform_3(%arg0: i32) -> (i32, i32) {
    %c0_i32 = arith.constant 0 : i32
    %c0_i32_0 = arith.constant 0 : i32
    %c0_i32_1 = arith.constant 0 : i32
    return %c0_i32, %c0_i32_0 : i32, i32
  }
  func.func @transform_4(%arg0: i32) -> (i32, i32) {
    %c0_i32 = arith.constant 0 : i32
    %c0_i32_0 = arith.constant 0 : i32
    %c0_i32_1 = arith.constant 0 : i32
    return %c0_i32, %c0_i32_0 : i32, i32
  }
  func.func @transform_5(%arg0: i32) -> (i32, i32) {
    %c0_i32 = arith.constant 0 : i32
    %c0_i32_0 = arith.constant 0 : i32
    %c0_i32_1 = arith.constant 0 : i32
    return %c0_i32, %c0_i32_0 : i32, i32
  }
  func.func @transform_6(%arg0: i32) -> (i32, i32) {
    %c0_i32 = arith.constant 0 : i32
    %c0_i32_0 = arith.constant 0 : i32
    %c0_i32_1 = arith.constant 0 : i32
    return %c0_i32, %c0_i32_0 : i32, i32
  }
  func.func @transform_7(%arg0: i32) -> (i32, i32) {
    %c0_i32 = arith.constant 0 : i32
    %c0_i32_0 = arith.constant 0 : i32
    %c0_i32_1 = arith.constant 0 : i32
    return %c0_i32, %c0_i32_0 : i32, i32
  }
  func.func @transform_8(%arg0: i32) -> (i32, i32) {
    %c0_i32 = arith.constant 0 : i32
    %c0_i32_0 = arith.constant 0 : i32
    %c0_i32_1 = arith.constant 0 : i32
    return %c0_i32, %c0_i32_0 : i32, i32
  }
  func.func @transform_9(%arg0: i32) -> (i32, i32) {
    %c0_i32 = arith.constant 0 : i32
    %c0_i32_0 = arith.constant 0 : i32
    %c0_i32_1 = arith.constant 0 : i32
    return %c0_i32, %c0_i32_0 : i32, i32
  }
  func.func @transform_10(%arg0: i32) -> (i32, i32) {
    %c0_i32 = arith.constant 0 : i32
    %c0_i32_0 = arith.constant 0 : i32
    %c0_i32_1 = arith.constant 0 : i32
    return %c0_i32, %c0_i32_0 : i32, i32
  }
  func.func @transform_11(%arg0: i32) -> (i32, i32) {
    %c0_i32 = arith.constant 0 : i32
    %c0_i32_0 = arith.constant 0 : i32
    return %arg0, %c0_i32 : i32, i32
  }
}

</mosaic_0001>

<bundles_post_ra>
// kernel: tpu_custom_call.1
= control target key start
LH: loop header
LB: loop body
LE: loop exit
PB: predicated region body
PF: predicated region fallthrough
CT: control target
= control target key end

     0   :  { %s2565_s0 = inlined_call_operand.hbm [shape: f32[16,32], index: 0, kind: input, shape index: {}]   ;;  %s2566_s1 = inlined_call_operand.hbm [shape: f32[16,32], index: 1, kind: input, shape index: {}]   ;;  %s2567_s2 = inlined_call_operand.hbm [shape: f32[16,32], index: 2, kind: input, shape index: {}]   ;;  %s2568_s3 = inlined_call_operand.hbm [shape: bf16[32,64], index: 3, kind: input, shape index: {}]   ;;  %s2569_s4 = inlined_call_operand.vmem [shape: f32[1,64], index: 4, kind: input, shape index: {}]   ;;  %s2570_s5 = inlined_call_operand.hbm [shape: bf16[32,64], index: 5, kind: input, shape index: {}]   ;;  %s2571_s6 = inlined_call_operand.vmem [shape: f32[1,64], index: 6, kind: input, shape index: {}]   ;;  %s2572_s7 = inlined_call_operand.hbm [shape: bf16[32,64], index: 7, kind: input, shape index: {}]   ;;  %s2573_s8 = inlined_call_operand.hbm [shape: f32[1,64], index: 8, kind: input, shape index: {}]   ;;  %s2574_s9 = inlined_call_operand.vmem [shape: bf16[64,128], index: 9, kind: input, shape index: {}]   ;;  %s2575_s10 = inlined_call_operand.vmem [shape: f32[1,128], index: 10, kind: input, shape index: {}]   ;;  %s2576_s11 = inlined_call_operand.hbm [shape: f32[16,128], index: 11, kind: output, shape index: {}]  }
   0x1   :  { %2601 = sst [smem:[#allocation27_spill]] %s2566_s1 }
   0x2   :  { %2602 = sst [smem:[#allocation28_spill]] %s2568_s3 }
   0x3   :  { %2603 = sst [smem:[#allocation29_spill]] %s2569_s4 }
   0x4   :  { %2604 = sst [smem:[#allocation30_spill]] %s2572_s7 }
   0x5   :  { %2605 = sst [smem:[#allocation31_spill]] %s2574_s9 }
   0x6   :  { %2606 = sst [smem:[#allocation32_spill]] %s2575_s10 }
   0x7   :  { %2607 = sst [smem:[#allocation33_spill]] %s2576_s11 }
   0x8   :  { %16 = vsyncpa [#allocation4], 0 }
   0x9   :  { %18 = vsyncpa [#allocation4 + $0x1], 0 }
   0xa   :  { %19 = vsyncpa [#allocation7], 0 }
   0xb   :  { %21 = vsyncpa [#allocation7 + $0x1], 0 }
   0xc   :  { %22 = vsyncpa [#allocation10], 0 }
   0xd   :  { %23 = vsyncpa [#allocation13], 0 }
   0xe   :  { %24 = vsyncpa [#allocation5], 0 }
   0xf   :  { %26 = vsyncpa [#allocation5 + $0x1], 0  ;;  %s2108_s17 = smov 0   ;;  %s2110_s18 = smov 0  }
  0x10   :  { %s2112_s19 = smov 0   ;;  %s2114_s20 = smov 0  }
  0x11 LB: > { %2608 = sst [smem:[#allocation21_spill]] %s2016_s17  ;;  %s2030_s21 = smov [#allocation9]   ;;  %s2028_s20 = sphi %s2114_s20, %s2650_s20   ;;  %s2024_s19 = sphi %s2112_s19, %s2654_s19   ;;  %s2020_s18 = sphi %s2110_s18, %s2653_s18   ;;  %s2016_s17 = sphi %s2108_s17, %s2652_s17  }
  0x12   : > { %2609 = sst [smem:[#allocation22_spill]] %s2028_s20  ;;  %s321_s22 = sshll.u32 %s2030_s21, 4  ;;  %s2134_s22 = int_to_ptr.vmem [resolvable:$true] %s321_s22 }
  0x13   : > { %s2129_s23 = sadd.s32 4294967295, %s2028_s20   ;;  %p1450_p0 = scmp.ge.s32.totalorder %s2028_s20, 1 }
  0x14   : > { %p2587_p1 = scmp.eq.s32.totalorder %s2129_s23, 0  ;;  %p309_p2 = scmp.lt.s32.totalorder %s2028_s20, 3 }
  0x15   : > { %s2031_s25 = smov [#allocation12]   ;;  %s2612_s3 = sld [smem:[#allocation28_spill]] }
  0x16   : > { %p2136_p3 = pnand %p1450_p0, %p309_p2  ;;  %s353_s26 = sshll.u32 %s2031_s25, 4  ;;  %s2149_s26 = int_to_ptr.vmem [resolvable:$true] %s353_s26 }
  0x18   : > { %s2610_s24 = scalar_select %p2136_p3, 1, 0 }
  0x19   : > { %p1639_p5 = pneg %p2136_p3 }
  0x1b   : > { %p2145_p6 = pnand %p1639_p5, %p2587_p1  ;;  %s1748_s30 = scalar_lea.hbm %s2612_s3, 256 }
  0x1c   : > { %p1749_p7 = scmp.ne.s32.totalorder %s2612_s3, %s1748_s30  ;;  %p1755_p11 = scmp.lt.u32.totalorder %s1748_s30, %s2612_s3 }
  0x1d   : > { %s2611_s27 = scalar_select %p2145_p6, 1, 0 }
  0x1e   : > { %p2159_p8 = pneg %p2145_p6 }
  0x20   : > { %s2613_s14 = scalar_select %p2159_p8, 1, 0 }
  0x21   : > { %p1751_p9 = pnand %p2159_p8, %p1749_p7 }
  0x23   : > { %p1752_p10 = pneg %p1751_p9 }
  0x25   : > { %p1757_p12 = pnand %p1755_p11, %p1752_p10 }
  0x27   : > { %1760 = shalt.err (!%p1757_p12)
}
  0x28   : > { %s1761_s21 = scalar_lea.vmem %s2134_s22, 256  ;;  %p1769_p5 = scmp.lt.s32.totalorder %s2134_s22, %s2134_s22 }
  0x29   : > { %p1762_p13 = scmp.ne.s32.totalorder %s2134_s22, %s1761_s21  ;;  %p1770_p4 = scmp.lt.s32.totalorder %s1761_s21, %s1761_s21 }
  0x2b   : > { %p1764_p0 = pnand %p1762_p13, %p2159_p8  ;;  %p1771_p7 = por %p1770_p4, %p1769_p5 }
  0x2d   : > { %p1765_p2 = pneg %p1764_p0 }
  0x2f   : > { %p1772_p9 = pnand %p1771_p7, %p1765_p2 }
  0x31   : > { %1775 = shalt.err (!%p1772_p9)
}
  0x32   : > { %s2579_s25 = smov 64   ;;  %s2580_s28 = smov 4  }
  0x33   : > { %1642 = dma.hbm_to_vmem [thread:$0]  (!%p2145_p6), %s2612_s3, 256, %s2134_s22, [#allocation10], %s2579_s25, %s2579_s25, %s2580_s28  }
  0x34   : > { %s2614_s7 = sld [smem:[#allocation30_spill]] }
  0x3a   : > { %s1776_s15 = scalar_lea.hbm %s2614_s7, 256 }
  0x3b   : > { %p1777_p4 = scmp.ne.s32.totalorder %s2614_s7, %s1776_s15  ;;  %p1783_p12 = scmp.lt.u32.totalorder %s1776_s15, %s2614_s7 }
  0x3d   : > { %p1779_p10 = pnand %p1777_p4, %p2159_p8 }
  0x3f   : > { %p1780_p11 = pneg %p1779_p10 }
  0x41   : > { %p1785_p13 = pnand %p1783_p12, %p1780_p11 }
  0x43   : > { %1788 = shalt.err (!%p1785_p13)
}
  0x44   : > { %s1789_s22 = scalar_lea.vmem %s2149_s26, 256  ;;  %p1797_p7 = scmp.lt.s32.totalorder %s2149_s26, %s2149_s26 }
  0x45   : > { %p1790_p0 = scmp.ne.s32.totalorder %s2149_s26, %s1789_s22  ;;  %p1798_p9 = scmp.lt.s32.totalorder %s1789_s22, %s1789_s22 }
  0x47   : > { %p1792_p2 = pnand %p1790_p0, %p2159_p8  ;;  %p1799_p4 = por %p1798_p9, %p1797_p7 }
  0x49   : > { %p1793_p5 = pneg %p1792_p2 }
  0x4b   : > { %p1800_p10 = pnand %p1799_p4, %p1793_p5 }
  0x4d   : > { %1803 = shalt.err (!%p1800_p10)
}
  0x4e   : > { %1648 = dma.hbm_to_vmem [thread:$0]  (!%p2145_p6), %s2614_s7, 256, %s2149_s26, [#allocation13], %s2579_s25, %s2579_s25, %s2580_s28  }
  0x4f   : > { %s1449_s29 = sadd.s32 4294967294, %s2028_s20   ;;  %s2211_s30 = sadd.s32 1, %s2028_s20  }
  0x50   : > { %2615 = sst [smem:[#allocation23_spill]] %s2211_s30  ;;  %s36_s12 = ssub.s32 %s2028_s20, %s2211_s30 }
  0x51   : > { %s39_s13 = sadd.s32 1, %s2024_s19  ;;  %p37_p11 = scmp.eq.s32.totalorder %s36_s12, 0 }
  0x52   : > { %p46_p12 = scmp.ne.s32.totalorder %s2024_s19, %s2020_s18  ;;  %p47_p13 = scmp.eq.s32.totalorder %s2028_s20, 0 }
  0x53   : > { %p52_p0 = scmp.ne.s32.totalorder %s2020_s18, %s2016_s17  ;;  %p296_p7 = scmp.eq.s32.totalorder %s2129_s23, 1 }
  0x54   : > { %s2222_s15 = scalar_select %p37_p11, %s2024_s19, %s39_s13  }
  0x55   : > { %p48_p2 = por %p47_p13, %p46_p12  ;;  %p2226_p5 = por %p2587_p1, %p52_p0 }
  0x56   : > { %2616 = sst [smem:[#allocation24_spill]] %s2222_s15  ;;  %p302_p9 = scmp.eq.s32.totalorder %s1449_s29, 1 }
  0x57   : > { %s2617_s16 = scalar_select %p2226_p5, 1, 0 }
  0x58   : > { %p1670_p4 = scmp.lt.s32.totalorder %s2028_s20, 2  ;;  %s2581_s26 = sand.u32 1, %s2024_s19  }
  0x59   : > { %p2233_p10 = por %p296_p7, %p46_p12  ;;  %p2237_p3 = por %p302_p9, %p52_p0 }
  0x5a   : > { %s2243_s10 = sshll.u32 %s2581_s26, 3  ;;  %s2246_s11 = sshll.u32 %s2028_s20, 7 }
  0x5b   : > { %s2618_s21 = scalar_select %p2233_p10, 1, 0 }
  0x5c   : > { %s2620_s22 = scalar_select %p2237_p3, 1, 0 }
  0x5d   : > { %2619 = sst [smem:[#allocation25_spill]] %s2618_s21  ;;  %p2248_p11 = pnand %p1670_p4, %p48_p2 }
  0x5e   : > { %2621 = sst [smem:[#allocation26_spill]] %s2620_s22  ;;  %s402_s29 = sand.u32 1, %s2028_s20  }
  0x5f   : > { %s2622_s12 = scalar_select %p2248_p11, 1, 0 }
  0x60   : > { %s2623_s1 = sld [smem:[#allocation27_spill]]  ;;  %s406_s26 = scalar_lea.vmem [#allocation6], %s2243_s10 }
  0x61   : > { %s413_s3 = sshll.u32 %s406_s26, 4  ;;  %s2034_s7 = smov [#allocation11]   ;;  %s2260_s3 = int_to_ptr.vmem [resolvable:$true] %s413_s3 }
  0x62   : > { %s2262_s15 = sshll.u32 %s2034_s7, 4  ;;  %s2264_s30 = scalar_lea.sflag [#allocation7], %s402_s29  ;;  %s338_s15 = int_to_ptr.vmem [resolvable:$true] %s2262_s15 }
  0x63   : > { %p2270_p13 = pneg %p2248_p11 }
  0x65   : > { %s2624_s25 = scalar_select %p2270_p13, 1, 0 }
  0x66   : > { %s2257_s28 = scalar_lea.hbm %s2623_s1, %s2246_s11  ;;  %s1809_s20 = scalar_lea.hbm %s2623_s1, 256 }
  0x67   : > { %s1804_s22 = scalar_lea.hbm %s2257_s28, 128  ;;  %p1810_p7 = scmp.lt.u32.totalorder %s2257_s28, %s2623_s1 }
  0x68   : > { %p1805_p12 = scmp.ne.s32.totalorder %s2257_s28, %s1804_s22  ;;  %p1811_p9 = scmp.lt.u32.totalorder %s1809_s20, %s1804_s22 }
  0x69   : > { %p1813_p1 = scmp.lt.u32.totalorder %s1804_s22, %s2257_s28 }
  0x6a   : > { %p1807_p0 = pnand %p2270_p13, %p1805_p12  ;;  %p1812_p4 = por %p1811_p9, %p1810_p7 }
  0x6c   : > { %p1808_p2 = pneg %p1807_p0  ;;  %p1814_p3 = por %p1813_p1, %p1812_p4 }
  0x6e   : > { %p1815_p10 = pnand %p1814_p3, %p1808_p2 }
  0x70   : > { %1818 = shalt.err (!%p1815_p10)
}
  0x71   : > { %s1819_s29 = scalar_lea.vmem %s2260_s3, 128  ;;  %s2035_s13 = smov [#allocation6]  }
  0x72   : > { %p1820_p12 = scmp.ne.s32.totalorder %s2260_s3, %s1819_s29  ;;  %s1824_s26 = sshll.u32 %s2035_s13, 4  ;;  %s1825_s26 = int_to_ptr.vmem [resolvable:$false] %s1824_s26 }
  0x73   : > { %s1826_s17 = scalar_lea.vmem %s1825_s26, 256  ;;  %p1827_p6 = scmp.lt.s32.totalorder %s2260_s3, %s1825_s26 }
  0x74   : > { %p1822_p0 = pnand %p1820_p12, %p2270_p13  ;;  %p1828_p8 = scmp.lt.s32.totalorder %s1826_s17, %s1819_s29 }
  0x76   : > { %p1823_p5 = pneg %p1822_p0  ;;  %p1829_p7 = por %p1828_p8, %p1827_p6 }
  0x78   : > { %p1830_p9 = pnand %p1829_p7, %p1823_p5 }
  0x7a   : > { %1833 = shalt.err (!%p1830_p9)
}
  0x7b   : > { %1658 = dma.hbm_to_vmem [thread:$0]  (!%p2248_p11), %s2257_s28, 128, %s2260_s3, %s2264_s30  }
  0x7c   : > { %s1834_s7 = scalar_lea.hbm %s2570_s5, 256  ;;  %p2625_p3 = scmp.ne.s32.totalorder %s2613_s14, 0 }
  0x7d   : > { %p1835_p1 = scmp.ne.s32.totalorder %s2570_s5, %s1834_s7  ;;  %p1841_p5 = scmp.lt.u32.totalorder %s1834_s7, %s2570_s5 }
  0x7f   : > { %p1837_p6 = pnand %p1835_p1, %p2625_p3 }
  0x81   : > { %p1838_p8 = pneg %p1837_p6 }
  0x83   : > { %p1843_p10 = pnand %p1841_p5, %p1838_p8 }
  0x85   : > { %1846 = shalt.err (!%p1843_p10)
}
  0x86   : > { %s1847_s17 = scalar_lea.vmem %s338_s15, 256  ;;  %p1855_p0 = scmp.lt.s32.totalorder %s338_s15, %s338_s15 }
  0x87   : > { %p1848_p2 = scmp.ne.s32.totalorder %s338_s15, %s1847_s17  ;;  %p1856_p7 = scmp.lt.s32.totalorder %s1847_s17, %s1847_s17 }
  0x89   : > { %p1850_p4 = pnand %p1848_p2, %p2625_p3  ;;  %p1857_p9 = por %p1856_p7, %p1855_p0 }
  0x8b   : > { %p1851_p12 = pneg %p1850_p4 }
  0x8d   : > { %p1858_p11 = pnand %p1857_p9, %p1851_p12 }
  0x8f   : > { %1861 = shalt.err (!%p1858_p11)
}
  0x90   : > { %p2626_p1 = scmp.ne.s32.totalorder %s2611_s27, 0  ;;  %s2627_s1 = smov 4  }
  0x91   : > { %s2628_s3 = smov 64   ;;  %s2036_s22 = smov [#allocation14]  }
  0x92   : > { %1645 = dma.hbm_to_vmem [thread:$0]  (!%p2626_p1), %s2570_s5, 256, %s338_s15, [#allocation10], %s2628_s3, %s2628_s3, %s2627_s1  }
  0x93   : > { %s367_s7 = sshll.u32 %s2036_s22, 4  ;;  %s1862_s26 = scalar_lea.hbm %s2573_s8, 16  ;;  %s368_s7 = int_to_ptr.vmem [resolvable:$true] %s367_s7 }
  0x94   : > { %p1863_p11 = scmp.ne.s32.totalorder %s2573_s8, %s1862_s26  ;;  %p1869_p5 = scmp.lt.u32.totalorder %s1862_s26, %s2573_s8 }
  0x96   : > { %p1865_p6 = pnand %p1863_p11, %p2625_p3 }
  0x98   : > { %p1866_p8 = pneg %p1865_p6 }
  0x9a   : > { %p1871_p10 = pnand %p1869_p5, %p1866_p8 }
  0x9c   : > { %1874 = shalt.err (!%p1871_p10)
}
  0x9d   : > { %s1875_s15 = scalar_lea.vmem %s368_s7, 16  ;;  %s1882_s1 = scalar_lea.vmem %s368_s7, 32 }
  0x9e   : > { %p1876_p2 = scmp.ne.s32.totalorder %s368_s7, %s1875_s15  ;;  %p1883_p0 = scmp.lt.s32.totalorder %s368_s7, %s368_s7 }
  0x9f   : > { %p1884_p7 = scmp.lt.s32.totalorder %s1882_s1, %s1875_s15 }
  0xa0   : > { %p1878_p4 = pnand %p1876_p2, %p2625_p3 }
  0xa1   : > { %p1885_p9 = por %p1884_p7, %p1883_p0 }
  0xa2   : > { %p1879_p12 = pneg %p1878_p4 }
  0xa4   : > { %p1886_p13 = pnand %p1885_p9, %p1879_p12 }
  0xa6   : > { %1889 = shalt.err (!%p1886_p13)
}
  0xa7   : > { %1651 = dma.hbm_to_vmem [thread:$0]  (!%p2626_p1), %s2573_s8, 16, %s368_s7, [#allocation13]  }
  0xa8   : > { %s2338_s14 = scalar_lea.hbm %s2565_s0, %s2246_s11  ;;  %s388_s28 = scalar_lea.vmem [#allocation3], %s2243_s10 }
  0xa9   : > { %s395_s20 = sshll.u32 %s388_s28, 4  ;;  %s2629_s27 = sand.u32 1, %s2024_s19   ;;  %s396_s20 = int_to_ptr.vmem [resolvable:$true] %s395_s20 }
  0xaa   : > { %s385_s22 = scalar_lea.sflag [#allocation4], %s2629_s27  ;;  %s1890_s13 = scalar_lea.hbm %s2338_s14, 128 }
  0xab   : > { %p1891_p13 = scmp.ne.s32.totalorder %s2338_s14, %s1890_s13  ;;  %p2630_p3 = scmp.ne.s32.totalorder %s2624_s25, 0 }
  0xac   : > { %s1895_s26 = scalar_lea.hbm %s2565_s0, 256  ;;  %p1896_p1 = scmp.lt.u32.totalorder %s2338_s14, %s2565_s0 }
  0xad   : > { %p1893_p11 = pnand %p1891_p13, %p2630_p3  ;;  %p1897_p8 = scmp.lt.u32.totalorder %s1895_s26, %s1890_s13 }
  0xae   : > { %p1899_p10 = scmp.lt.u32.totalorder %s1890_s13, %s2338_s14 }
  0xaf   : > { %p1894_p6 = pneg %p1893_p11  ;;  %p1898_p5 = por %p1897_p8, %p1896_p1 }
  0xb1   : > { %p1900_p2 = por %p1899_p10, %p1898_p5 }
  0xb3   : > { %p1901_p4 = pnand %p1900_p2, %p1894_p6 }
  0xb5   : > { %1904 = shalt.err (!%p1901_p4)
}
  0xb6   : > { %s1905_s1 = scalar_lea.vmem %s396_s20, 128  ;;  %s2037_s21 = smov [#allocation3]  }
  0xb7   : > { %p1906_p12 = scmp.ne.s32.totalorder %s396_s20, %s1905_s1  ;;  %s1910_s3 = sshll.u32 %s2037_s21, 4  ;;  %s1911_s3 = int_to_ptr.vmem [resolvable:$false] %s1910_s3 }
  0xb8   : > { %s1912_s4 = scalar_lea.vmem %s1911_s3, 256  ;;  %p1913_p9 = scmp.lt.s32.totalorder %s396_s20, %s1911_s3 }
  0xb9   : > { %p1908_p0 = pnand %p1906_p12, %p2630_p3  ;;  %p1914_p13 = scmp.lt.s32.totalorder %s1912_s4, %s1905_s1 }
  0xbb   : > { %p1909_p7 = pneg %p1908_p0  ;;  %p1915_p11 = por %p1914_p13, %p1913_p9 }
  0xbd   : > { %p1916_p1 = pnand %p1915_p11, %p1909_p7 }
  0xbf   : > { %1919 = shalt.err (!%p1916_p1)
}
  0xc0   : > { %p2631_p8 = scmp.ne.s32.totalorder %s2622_s12, 0  ;;  %s2364_s27 = scalar_lea.hbm %s2567_s2, %s2246_s11 }
  0xc1   : > { %s424_s13 = scalar_lea.vmem [#allocation8], %s2243_s10  ;;  %s1920_s29 = scalar_lea.hbm %s2364_s27, 128 }
  0xc2   : > { %1655 = dma.hbm_to_vmem [thread:$0]  (!%p2631_p8), %s2338_s14, 128, %s396_s20, %s385_s22  }
  0xc3   : > { %s431_s7 = sshll.u32 %s424_s13, 4  ;;  %p1921_p6 = scmp.ne.s32.totalorder %s2364_s27, %s1920_s29  ;;  %s432_s7 = int_to_ptr.vmem [resolvable:$true] %s431_s7 }
  0xc4   : > { %s1925_s14 = scalar_lea.hbm %s2567_s2, 256  ;;  %p1926_p2 = scmp.lt.u32.totalorder %s2364_s27, %s2567_s2 }
  0xc5   : > { %p1923_p5 = pnand %p1921_p6, %p2630_p3  ;;  %p1927_p4 = scmp.lt.u32.totalorder %s1925_s14, %s1920_s29 }
  0xc6   : > { %p1929_p0 = scmp.lt.u32.totalorder %s1920_s29, %s2364_s27 }
  0xc7   : > { %p1924_p10 = pneg %p1923_p5  ;;  %p1928_p12 = por %p1927_p4, %p1926_p2 }
  0xc9   : > { %p1930_p7 = por %p1929_p0, %p1928_p12 }
  0xcb   : > { %p1931_p9 = pnand %p1930_p7, %p1924_p10 }
  0xcd   : > { %1934 = shalt.err (!%p1931_p9)
}
  0xce   : > { %s1935_s10 = scalar_lea.vmem %s432_s7, 128  ;;  %s2038_s11 = smov [#allocation8]  }
  0xcf   : > { %p1936_p13 = scmp.ne.s32.totalorder %s432_s7, %s1935_s10  ;;  %s1940_s15 = sshll.u32 %s2038_s11, 4  ;;  %s1941_s15 = int_to_ptr.vmem [resolvable:$false] %s1940_s15 }
  0xd0   : > { %s1942_s1 = scalar_lea.vmem %s1941_s15, 256  ;;  %p1943_p6 = scmp.lt.s32.totalorder %s432_s7, %s1941_s15 }
  0xd1   : > { %p1938_p11 = pnand %p1936_p13, %p2630_p3  ;;  %p1944_p5 = scmp.lt.s32.totalorder %s1942_s1, %s1935_s10 }
  0xd3   : > { %p1939_p1 = pneg %p1938_p11  ;;  %p1945_p8 = por %p1944_p5, %p1943_p6 }
  0xd5   : > { %p1946_p2 = pnand %p1945_p8, %p1939_p1 }
  0xd7   : > { %1949 = shalt.err (!%p1946_p2)
}
  0xd8   : > { %p2632_p4 = scmp.ne.s32.totalorder %s2622_s12, 0  ;;  %p2633_p10 = scmp.ne.s32.totalorder %s2610_s24, 0 }
  0xd9   : > { %s2388_s25 = sand.u32 (!%p2633_p10), 1, %s2020_s18   ;;  %p2634_p3 = scmp.ne.s32.totalorder (!%p2633_p10), %s2617_s16, 0 }
  0xda   : > { %1661 = dma.hbm_to_vmem [thread:$0]  (!%p2632_p4), %s2364_s27, 128, %s432_s7, %s2264_s30  }
  0xdb   : > { %440 = sbr.rel (%p2633_p10) target bundleno = 1695 (0x69f), region = 64  ;;  %s2391_s21 = sshll.u32 (!%p2633_p10), %s2388_s25, 3 }
  0xdc   : > { %s443_s3 = scalar_lea.sflag (!%p2633_p10), [#allocation4], %s2388_s25  ;;  %s446_s4 = scalar_lea.vmem (!%p2633_p10), [#allocation3], %s2391_s21 }
  0xe2   : > { %1995 = dma.done.wait (%p2634_p3), %s443_s3, 128  }
  0xe3   : > { %1997 = vsyncadd (%p2634_p3), %s443_s3, 4294967168  ;;  %s451_s24 = sand.u32 1, %s2129_s23   ;;  %s455_s12 = scalar_lea.vmem [#allocation6], %s2391_s21 }
  0xe4   : > { %s452_s30 = scalar_lea.sflag [#allocation7], %s451_s24 }
  0xe5   : > { %1999 = dma.done.wait (%p2634_p3), %s452_s30, 256  }
  0xe6   : > { %2001 = vsyncadd (%p2634_p3), %s452_s30, 4294967040  ;;  %s464_s9 = scalar_lea.vmem [#allocation8], %s2391_s21  ;;  %p2635_p8 = scmp.eq.s32.totalorder %s2129_s23, 0 }
  0xe8   : > { %2003 = dma.done.wait (%p2635_p8), [#allocation10], 512   ;;  %p2636_p12 = pmov %p2635_p8 }
  0xe9   : > { %p2637_p0 = pmov %p2635_p8 }
  0xea   : > { %2005 = vsyncadd (%p2636_p12), [#allocation10], 4294966784 }
  0xeb   : > { %2007 = dma.done.wait (%p2637_p0), [#allocation13], 272   ;;  %p2638_p7 = pmov %p2637_p0 }
  0xec   : > { %v2039_v0 = vmov 0.0   ;;  %vm2040_vm0 = vmmov 0   ;;  %v1722_v1 = vld [vmem:[#allocation11] sm:$0xff]   ;;  %v1723_v2 = vld [vmem:[#allocation9] sm:$0xff]   ;;  %v1724_v3 = vld [vmem:[#allocation11 + $0x8] sm:$0xff]   ;;  %vm559_vm1 = vcmask 261120  }
  0xed   : > { %2009 = vsyncadd (%p2638_p7), [#allocation13], 4294967024  ;;  %1539 = vmatprep.subr.bf16.mxu1 %v2039_v0  ;;  %1531 = vmatprep.subr.bf16.mxu0 %v2039_v0  ;;  %v1725_v4 = vld [vmem:[#allocation9 + $0x8] sm:$0xff]   ;;  %v530_v6 = vld [vmem:[%s446_s4] sm:$0xff]  ;;  %s2639_s7 = sld [smem:[#allocation29_spill]]  ;;  %vm739_vm2 = vcmask 130048  }
  0xee   : > { %1543 = vmatprep.mubr.msk.bf16.mxu1 %vm2040_vm0, %v2039_v0  ;;  %1535 = vmatprep.mubr.msk.bf16.mxu0 %vm2040_vm0, %v2039_v0  ;;  %v532_v5 = vld [vmem:[%s455_s12] sm:$0xff]  ;;  %v531_v8 = vpack.c.bf16 %v530_v6, %v530_v6  ;;  %s2041_s29 = smov 96   ;;  %s2042_s26 = smov 112   ;;  %v534_v27 = vld [vmem:[%s464_s9] sm:$0xff]  ;;  %vm786_vm3 = vcmask 64512   ;;  %vm802_vm4 = vcmask 1043456  }
  0xef   : > { %1540 = vmatpush3.bf16.msra.mxu1 %v1722_v1  ;;  %1532 = vmatpush3.bf16.msra.mxu0 %v1723_v2  ;;  %v533_v7 = vpack.c.bf16 %v532_v5, %v532_v5  ;;  %v1475_v9 = vld [vmem:[%s2571_s6] ss:$0 sm:$0xff]  ;;  %s2043_s17 = smov 80   ;;  %v1726_v25 = vld [vmem:[#allocation12] sm:$0xff]   ;;  %v535_v28 = vpack.c.bf16 %v534_v27, %v534_v27  ;;  %v1479_v43 = vld [vmem:[#allocation14] ss:$0 sm:$0xff] }
  0xf0   : > { %1541 = vmatprep.subr.bf16.mxu1 %v2039_v0  ;;  %1533 = vmatprep.subr.bf16.mxu0 %v2039_v0  ;;  %v1727_v26 = vld [vmem:[#allocation12 + $0x8] sm:$0xff]   ;;  %s2640_s22 = sld [smem:[#allocation31_spill]]  ;;  %s2044_s15 = smov 16   ;;  %vm964_vm5 = vcmask 261248   ;;  %vm1080_vm6 = vcmask 392448   ;;  %vm1196_vm7 = vcmask 523648  }
  0xf1   : > { %s2045_s30 = smov 32   ;;  %s2046_s12 = smov 48   ;;  %vm1239_vm8 = vcmask 523264  }
  0xf2   : > { %s2641_s28 = sld [smem:[#allocation32_spill]]  ;;  %s2642_s27 = sld [smem:[#allocation25_spill]] }
  0xf3   : > { %1542 = vmatpush3.bf16.msra.mxu1 %v1724_v3  ;;  %1534 = vmatpush3.bf16.msra.mxu0 %v1725_v4  ;;  %v1471_v10 = vld [vmem:[%s2639_s7] ss:$0 sm:$0xff]  ;;  %s1498_s13 = sshll.u32 %s2129_s23, 7  ;;  %s528_s7 = scalar_lea.vmem [#allocation15], %s2391_s21 }
  0xf4   : > { %1555 = vmatprep.subr.bf16.mxu1 %v2039_v0  ;;  %1547 = vmatprep.subr.bf16.mxu0 %v2039_v0  ;;  %s2643_s14 = sld [smem:[#allocation33_spill]]  ;;  %s1285_s10 = scalar_lea.sflag [#allocation5], %s2388_s25 }
  0xf5   : > { %s2047_s21 = smov [#allocation15]  }
  0xf6   : > { %1544 = vmatmul.mubr.msk.bf16.vlgmr.msra.gmra.mrb[0].mxu1 %vm559_vm1, %v533_v7  ;;  %1536 = vmatmul.mubr.msk.bf16.vlgmr.msra.gmra.mrb[0].mxu0 %vm559_vm1, %v531_v8  ;;  %s1954_s11 = sshll.u32 %s2047_s21, 4  ;;  %s1955_s11 = int_to_ptr.vmem [resolvable:$false] %s1954_s11 }
  0xf7   : > { %1557 = vmatprep.mubr.msk.bf16.mxu1 %vm2040_vm0, %v2039_v0  ;;  %1551 = vmatprep.mubr.msk.bf16.mxu0 %vm2040_vm0, %v2039_v0 }
  0xf8   : > { %1548 = vmatpush3.bf16.msra.mxu0 %v1726_v25  ;;  %p2644_p13 = scmp.ne.s32.totalorder %s2642_s27, 0 }
  0xf9   : > { %1549 = vmatprep.subr.bf16.mxu0 %v2039_v0 }
  0xfa   : > { %s2521_s20 = scalar_lea.hbm %s2643_s14, %s1498_s13 }
  0xfc   : > { %1550 = vmatpush3.bf16.msra.mxu0 %v1727_v26 }
  0xfd   : > { %1561 = vmatprep.subr.bf16.mxu0 %v2039_v0 }
  0xff   : > { %1552 = vmatmul.mubr.msk.bf16.vlgmr.msra.gmra.mrb[4].mxu0 %vm559_vm1, %v535_v28 }
 0x100   : > { %1563 = vmatprep.mubr.msk.bf16.mxu0 %vm2040_vm0, %v2039_v0 }
 0x1c9   : > { %v665_v11 = vpop.f32.mrb[0].mxu1  ;;  %v597_v14 = vpop.f32.mrb[0].mxu0 }
 0x1ca   : > { %v666_v12 = vadd.f32 %v1475_v9, %v665_v11  ;;  %v1545_v13 = vpop.f32.mrb[1].mxu1  ;;  %v598_v15 = vadd.f32 %v1471_v10, %v597_v14  ;;  %v1537_v17 = vpop.f32.mrb[1].mxu0 }
 0x1cb   : > { %v668_v16 = vpop.f32.mrb[2].mxu1  ;;  %v600_v20 = vpop.f32.mrb[2].mxu0 }
 0x1cc   : > { %v671_v18 = vpack.c.bf16 %v666_v12, %v666_v12  ;;  %v1546_v19 = vpop.f32.mrb[3].mxu1  ;;  %v603_v21 = vmul.f32 0.25, %v598_v15  ;;  %v1538_v22 = vpop.f32.mrb[3].mxu0 }
 0x1ce   : > { %968 = vrot.lane.b32.xlu1 %v671_v18, %s2041_s29  ;;  %851 = vrot.lane.b32.xlu0 %v671_v18, %s2042_s26  ;;  %v744_v23 = vsel %vm739_vm2, %v671_v18, 0  ;;  %v604_v24 = vpack.c.bf16 %v603_v21, %v603_v21 }
 0x1cf   : > { %1556 = vmatpush3.bf16.xpose.msra.mxu1 %v744_v23 }
 0x1d0   : > { %1567 = vmatprep.subr.bf16.mxu1 %v2039_v0 }
 0x1d2   : > { %966 = vrot.lane.b32.xlu1 %v604_v24, %s2041_s29  ;;  %848 = vrot.lane.b32.xlu0 %v604_v24, %s2042_s26  ;;  %v732_v44 = vpop.f32.mrb[4].mxu0 }
 0x1d3   : > { %v733_v45 = vadd.f32 %v1479_v43, %v732_v44  ;;  %v1553_v46 = vpop.f32.mrb[5].mxu0 }
 0x1d4   : > { %v735_v47 = vpop.f32.mrb[6].mxu0 }
 0x1d5   : > { %v738_v48 = vpack.c.bf16 %v733_v45, %v733_v45  ;;  %v1554_v49 = vpop.f32.mrb[7].mxu0 }
 0x1d6   : > { %1082 = vrot.lane.b32.xlu1 %v604_v24, %s2043_s17  ;;  %1084 = vrot.lane.b32.xlu0 %v671_v18, %s2043_s17  ;;  %v1728_v49 = vld [vmem:[%s2640_s22] sm:$0xff]  }
 0x1d7   : > { %1558 = vmatmul.mubr.msk.bf16.vlgmr.msra.gmra.mrb[4].mxu1 %vm739_vm2, %v604_v24  ;;  %v804_v50 = vsel %vm802_vm4, %v738_v48, 0 }
 0x1d8   : > { %1569 = vmatprep.mubr.msk.bf16.mxu1 %vm2040_vm0, %v2039_v0  ;;  %1562 = vmatpush3.bf16.msra.mxu0 %v804_v50  ;;  %v1729_v50 = vld [vmem:[%s2640_s22 + $0x8] sm:$0xff]  }
 0x1d9   : > { %1573 = vmatprep.subr.bf16.mxu0 %v2039_v0 }
 0x240   : > { %v852_v29 = vpop.permute.xlu0 %851  ;;  %v969_v31 = vpop.permute.xlu1 %968 }
 0x241   : > { %v857_v30 = vsel %vm739_vm2, %v852_v29, 0  ;;  %v974_v33 = vsel %vm739_vm2, %v969_v31, 0 }
 0x242   : > { %1568 = vmatpush3.bf16.xpose.msra.mxu1 %v857_v30 }
 0x243   : > { %1579 = vmatprep.subr.bf16.mxu1 %v2039_v0 }
 0x244   : > { %v849_v32 = vpop.permute.xlu0 %848  ;;  %v967_v35 = vpop.permute.xlu1 %966 }
 0x248   : > { %v1085_v34 = vpop.permute.xlu0 %1084  ;;  %v1083_v37 = vpop.permute.xlu1 %1082 }
 0x249   : > { %1570 = vmatmul.mubr.msk.bf16.vlgmr.msra.gmra.mrb[8].mxu1 %vm739_vm2, %v849_v32  ;;  %v1090_v36 = vsel %vm739_vm2, %v1085_v34, 0 }
 0x24a   : > { %1580 = vmatpush3.bf16.xpose.msra.mxu1 %v974_v33  ;;  %1581 = vmatprep.mubr.msk.bf16.mxu1 %vm2040_vm0, %v2039_v0 }
 0x24b   : > { %1591 = vmatprep.subr.bf16.mxu1 %v2039_v0 }
 0x251   : > { %1582 = vmatmul.mubr.msk.bf16.vlgmr.msra.gmra.mrb[12].mxu1 %vm739_vm2, %v967_v35 }
 0x252   : > { %1592 = vmatpush3.bf16.xpose.msra.mxu1 %v1090_v36  ;;  %1593 = vmatprep.mubr.msk.bf16.mxu1 %vm2040_vm0, %v2039_v0 }
 0x253   : > { %1603 = vmatprep.subr.bf16.mxu1 %v2039_v0 }
 0x259   : > { %1594 = vmatmul.mubr.msk.bf16.vlgmr.msra.gmra.mrb[16].mxu1 %vm739_vm2, %v1083_v37 }
 0x25a   : > { %1611 = vmatprep.mubr.msk.bf16.mxu1 %vm2040_vm0, %v2039_v0  ;;  %1604 = vmatpush3.bf16.msra.mxu1 %v1728_v49 }
 0x25b   : > { %1605 = vmatprep.subr.bf16.mxu1 %v2039_v0 }
 0x25e   : > { %1606 = vmatpush3.bf16.msra.mxu1 %v1729_v50 }
 0x25f   : > { %1607 = vmatprep.subr.bf16.mxu1 %v2039_v0 }
 0x2aa   : > { %v780_v38 = vpop.f32.mrb[4].mxu1 }
 0x2ab   : > { %v1559_v39 = vpop.f32.mrb[5].mxu1  ;;  %v787_v40 = vsel %vm786_vm3, %v780_v38, -inf }
 0x2ac   : > { %788 = vmax.xlane.f32.xlu0 %v787_v40  ;;  %v783_v41 = vpop.f32.mrb[6].mxu1 }
 0x2ad   : > { %v1560_v42 = vpop.f32.mrb[7].mxu1 }
 0x31c   : > { %v893_v51 = vpop.f32.mrb[8].mxu1 }
 0x31d   : > { %v1571_v52 = vpop.f32.mrb[9].mxu1  ;;  %v899_v53 = vsel %vm786_vm3, %v893_v51, -inf }
 0x31e   : > { %900 = vmax.xlane.f32.xlu1 %v899_v53  ;;  %v896_v54 = vpop.f32.mrb[10].mxu1 }
 0x31f   : > { %v1572_v55 = vpop.f32.mrb[11].mxu1 }
 0x320   : > { %v1730_v55 = vld [vmem:[%s2640_s22 + $0x10] sm:$0xff]  }
 0x321   : > { %1608 = vmatpush3.bf16.msra.mxu1 %v1730_v55 }
 0x322   : > { %1609 = vmatprep.subr.bf16.mxu1 %v2039_v0 }
 0x324   : > { %v1010_v56 = vpop.f32.mrb[12].mxu1 }
 0x325   : > { %v1583_v57 = vpop.f32.mrb[13].mxu1  ;;  %v1016_v58 = vsel %vm786_vm3, %v1010_v56, -inf }
 0x326   : > { %1017 = vmax.xlane.f32.xlu0 %v1016_v58  ;;  %v1013_v59 = vpop.f32.mrb[14].mxu1 }
 0x327   : > { %v1584_v60 = vpop.f32.mrb[15].mxu1 }
 0x32c   : > { %v1126_v61 = vpop.f32.mrb[16].mxu1 }
 0x32d   : > { %v1595_v62 = vpop.f32.mrb[17].mxu1  ;;  %v1132_v63 = vsel %vm786_vm3, %v1126_v61, -inf }
 0x32e   : > { %1133 = vmax.xlane.f32.xlu0 %v1132_v63  ;;  %v1129_v1 = vpop.f32.mrb[18].mxu1 }
 0x32f   : > { %v1596_v2 = vpop.f32.mrb[19].mxu1 }
 0x339   : > { %v789_v3 = vpop.xlane.xlu0 %788 }
 0x33a   : > { %v790_v4 = vsub.f32 %v780_v38, %v789_v3 }
 0x33c   : > { %v791_v5 = vmul.f32 1.442695, %v790_v4 }
 0x33e   : > { %1732 = vpow2.f32 %v791_v5 }
 0x348   : > { %v1733_v6 = vpop.eup %1732 }
 0x349   : > { %v793_v7 = vsel %vm786_vm3, %v1733_v6, 0.0 }
 0x34a   : > { %794 = vadd.xlane.f32.xlu1 %v793_v7 }
 0x35b   : > { %912 = vrot.lane.b32.xlu1 %v738_v48, %s2042_s26 }
 0x3ab   : > { %v901_v8 = vpop.xlane.xlu1 %900 }
 0x3ac   : > { %v902_v9 = vsub.f32 %v893_v51, %v901_v8 }
 0x3ae   : > { %v903_v10 = vmul.f32 1.442695, %v902_v9 }
 0x3b0   : > { %1734 = vpow2.f32 %v903_v10 }
 0x3b3   : > { %v1018_v11 = vpop.xlane.xlu0 %1017 }
 0x3b4   : > { %v1019_v12 = vsub.f32 %v1010_v56, %v1018_v11  ;;  %v1731_v56 = vld [vmem:[%s2640_s22 + $0x18] sm:$0xff]  }
 0x3b5   : > { %1610 = vmatpush3.bf16.msra.mxu1 %v1731_v56 }
 0x3b6   : > { %v1020_v13 = vmul.f32 1.442695, %v1019_v12 }
 0x3b8   : > { %1736 = vpow2.f32 %v1020_v13 }
 0x3ba   : > { %v1735_v14 = vpop.eup %1734 }
 0x3bb   : > { %v1134_v15 = vpop.xlane.xlu0 %1133  ;;  %v905_v16 = vsel %vm786_vm3, %v1735_v14, 0.0 }
 0x3bc   : > { %v1135_v17 = vsub.f32 %v1126_v61, %v1134_v15  ;;  %906 = vadd.xlane.f32.xlu0 %v905_v16 }
 0x3be   : > { %v1136_v18 = vmul.f32 1.442695, %v1135_v17 }
 0x3c0   : > { %1738 = vpow2.f32 %v1136_v18 }
 0x3c2   : > { %v1737_v19 = vpop.eup %1736 }
 0x3c3   : > { %v1022_v20 = vsel %vm786_vm3, %v1737_v19, 0.0 }
 0x3c4   : > { %1023 = vadd.xlane.f32.xlu1 %v1022_v20 }
 0x3ca   : > { %v1739_v21 = vpop.eup %1738 }
 0x3cb   : > { %v1138_v22 = vsel %vm786_vm3, %v1739_v21, 0.0 }
 0x3cc   : > { %1139 = vadd.xlane.f32.xlu0 %v1138_v22 }
 0x3d5   : > { %1144 = vrot.lane.b32.xlu1 %v738_v48, %s2043_s17 }
 0x3d7   : > { %v795_v23 = vpop.xlane.xlu1 %794 }
 0x3d8   : > { %1740 = vrcp.f32 %v795_v23 }
 0x3db   : > { %v913_v25 = vpop.permute.xlu1 %912 }
 0x3dc   : > { %v918_v28 = vsel %vm802_vm4, %v913_v25, 0 }
 0x3e2   : > { %v1741_v24 = vpop.eup %1740  ;;  %1028 = vrot.lane.b32.xlu0 %v738_v48, %s2041_s29  ;;  %s1298_s29 = sshll.u32 %s528_s7, 4  ;;  %s2523_s29 = int_to_ptr.vmem [resolvable:$true] %s1298_s29 }
 0x3e3   : > { %v797_v26 = vmul.f32 %v1741_v24, %v1733_v6  ;;  %v1491_v6 = vld [vmem:[%s2641_s28] ss:$0 sm:$0xff]  ;;  %s1950_s23 = scalar_lea.vmem %s2523_s29, 128  ;;  %p1957_p6 = scmp.lt.s32.totalorder %s2523_s29, %s1955_s11 }
 0x3e4   : > { %p1951_p9 = scmp.ne.s32.totalorder %s2523_s29, %s1950_s23 }
 0x3e5   : > { %v798_v27 = vpack.c.bf16 %v797_v26, %v797_v26 }
 0x3e6   : > { %p1952_p11 = pnand %p1951_p9, %p2644_p13 }
 0x3e7   : > { %1564 = vmatmul.mubr.msk.bf16.vlgmr.msra.gmra.mrb[8].mxu0 %vm786_vm3, %v798_v27 }
 0x3e8   : > { %1574 = vmatpush3.bf16.msra.mxu0 %v918_v28  ;;  %1575 = vmatprep.mubr.msk.bf16.mxu0 %vm2040_vm0, %v2039_v0  ;;  %p1953_p1 = pneg %p1952_p11 }
 0x3e9   : > { %1585 = vmatprep.subr.bf16.mxu0 %v2039_v0 }
 0x449   : > { %v907_v29 = vpop.xlane.xlu0 %906 }
 0x44a   : > { %1742 = vrcp.f32 %v907_v29 }
 0x451   : > { %v1024_v30 = vpop.xlane.xlu1 %1023 }
 0x452   : > { %1744 = vrcp.f32 %v1024_v30 }
 0x454   : > { %v1743_v31 = vpop.eup %1742 }
 0x455   : > { %v909_v32 = vmul.f32 %v1743_v31, %v1735_v14  ;;  %v1145_v39 = vpop.permute.xlu1 %1144 }
 0x456   : > { %v1150_v41 = vsel %vm802_vm4, %v1145_v39, 0 }
 0x457   : > { %v910_v33 = vpack.c.bf16 %v909_v32, %v909_v32 }
 0x459   : > { %v1140_v34 = vpop.xlane.xlu0 %1139  ;;  %1576 = vmatmul.mubr.msk.bf16.vlgmr.msra.gmra.mrb[12].mxu0 %vm786_vm3, %v910_v33 }
 0x45a   : > { %1746 = vrcp.f32 %v1140_v34  ;;  %1587 = vmatprep.mubr.msk.bf16.mxu0 %vm2040_vm0, %v2039_v0 }
 0x45c   : > { %v1745_v35 = vpop.eup %1744 }
 0x45d   : > { %v1026_v36 = vmul.f32 %v1745_v35, %v1737_v19  ;;  %v1029_v37 = vpop.permute.xlu0 %1028 }
 0x45e   : > { %v1034_v38 = vsel %vm802_vm4, %v1029_v37, 0 }
 0x45f   : > { %1586 = vmatpush3.bf16.msra.mxu0 %v1034_v38  ;;  %v1027_v40 = vpack.c.bf16 %v1026_v36, %v1026_v36 }
 0x460   : > { %1597 = vmatprep.subr.bf16.mxu0 %v2039_v0 }
 0x462   : > { %1588 = vmatmul.mubr.msk.bf16.vlgmr.msra.gmra.mrb[16].mxu0 %vm786_vm3, %v1027_v40 }
 0x463   : > { %1598 = vmatpush3.bf16.msra.mxu0 %v1150_v41  ;;  %1599 = vmatprep.mubr.msk.bf16.mxu0 %vm2040_vm0, %v2039_v0 }
 0x464   : > { %v1747_v42 = vpop.eup %1746 }
 0x465   : > { %v1142_v43 = vmul.f32 %v1747_v42, %v1739_v21 }
 0x467   : > { %v1143_v44 = vpack.c.bf16 %v1142_v43, %v1142_v43 }
 0x46a   : > { %1600 = vmatmul.mubr.msk.bf16.vlgmr.msra.gmra.mrb[20].mxu0 %vm786_vm3, %v1143_v44 }
 0x4ba   : > { %v840_v45 = vpop.f32.mrb[8].mxu0 }
 0x4bb   : > { %846 = vst.msk [vmem:[#allocation2] sm:$0xff] %vm739_vm2, %v840_v45  ;;  %v1565_v46 = vpop.f32.mrb[9].mxu0 }
 0x4bc   : > { %v843_v47 = vpop.f32.mrb[10].mxu0 }
 0x4bd   : > { %v1566_v48 = vpop.f32.mrb[11].mxu0 }
 0x52c   : > { %v954_v51 = vpop.f32.mrb[12].mxu0 }
 0x52d   : > { %961 = vrot.lane.b32.xlu1 %v954_v51, %s2044_s15  ;;  %v1577_v52 = vpop.f32.mrb[13].mxu0  ;;  %s1956_s15 = scalar_lea.vmem %s1955_s11, 256 }
 0x52e   : > { %v957_v53 = vpop.f32.mrb[14].mxu0  ;;  %p1958_p5 = scmp.lt.s32.totalorder %s1956_s15, %s1950_s23 }
 0x52f   : > { %v1578_v54 = vpop.f32.mrb[15].mxu0 }
 0x530   : > { %p1959_p2 = por %p1958_p5, %p1957_p6 }
 0x532   : > { %p1960_p4 = pnand %p1959_p2, %p1953_p1 }
 0x535   : > { %v1070_v57 = vpop.f32.mrb[16].mxu0 }
 0x536   : > { %1077 = vrot.lane.b32.xlu0 %v1070_v57, %s2045_s30  ;;  %v1589_v58 = vpop.f32.mrb[17].mxu0 }
 0x537   : > { %v1073_v59 = vpop.f32.mrb[18].mxu0 }
 0x538   : > { %v1590_v60 = vpop.f32.mrb[19].mxu0 }
 0x53d   : > { %v1186_v61 = vpop.f32.mrb[20].mxu0 }
 0x53e   : > { %1193 = vrot.lane.b32.xlu1 %v1186_v61, %s2046_s12  ;;  %v1601_v62 = vpop.f32.mrb[21].mxu0 }
 0x53f   : > { %v1189_v63 = vpop.f32.mrb[22].mxu0 }
 0x540   : > { %v1602_v1 = vpop.f32.mrb[23].mxu0 }
 0x59f   : > { %v962_v2 = vpop.permute.xlu1 %961 }
 0x5a0   : > { %965 = vst.msk [vmem:[#allocation2] sm:$0xff] %vm964_vm5, %v962_v2 }
 0x5a8   : > { %v1078_v0 = vpop.permute.xlu0 %1077 }
 0x5a9   : > { %1081 = vst.msk [vmem:[#allocation2] sm:$0xff] %vm1080_vm6, %v1078_v0 }
 0x5b0   : > { %v1194_v3 = vpop.permute.xlu1 %1193 }
 0x5b1   : > { %1197 = vst.msk [vmem:[#allocation2] sm:$0xff] %vm1196_vm7, %v1194_v3 }
 0x5b8   : > { %v1198_v4 = vld [vmem:[#allocation2] sm:$0xff] }
 0x5b9   : > { %v1199_v5 = vpack.c.bf16 %v1198_v4, %v1198_v4 }
 0x5bb   : > { %1612 = vmatmul.mubr.msk.bf16.vlgmr.msra.gmra.mrb[20].mxu1 %vm1239_vm8, %v1199_v5 }
 0x68e   : > { %v1277_v7 = vpop.f32.mrb[20].mxu1 }
 0x68f   : > { %v1278_v8 = vadd.f32 %v1491_v6, %v1277_v7  ;;  %v1613_v9 = vpop.f32.mrb[21].mxu1 }
 0x690   : > { %v1280_v10 = vpop.f32.mrb[22].mxu1 }
 0x691   : > { %1283 = vst [vmem:[%s528_s7] sm:$0xff] %v1278_v8  ;;  %v1614_v11 = vpop.f32.mrb[23].mxu1 }
 0x692   : > { %1963 = shalt.err (!%p1960_p4)
}
 0x693   : > { %s1964_s25 = scalar_lea.hbm %s2521_s20, 128  ;;  %s1968_s4 = scalar_lea.hbm %s2643_s14, 256 }
 0x694   : > { %p1965_p10 = scmp.ne.s32.totalorder %s2521_s20, %s1964_s25  ;;  %p1969_p12 = scmp.lt.u32.totalorder %s2521_s20, %s2643_s14 }
 0x695   : > { %p1970_p0 = scmp.lt.u32.totalorder %s1968_s4, %s1964_s25  ;;  %p1972_p9 = scmp.lt.u32.totalorder %s1964_s25, %s2521_s20 }
 0x696   : > { %p1966_p3 = pnand %p1965_p10, %p2644_p13 }
 0x697   : > { %p1971_p7 = por %p1970_p0, %p1969_p12 }
 0x698   : > { %p1967_p8 = pneg %p1966_p3 }
 0x699   : > { %p1973_p11 = por %p1972_p9, %p1971_p7 }
 0x69b   : > { %p1974_p1 = pnand %p1973_p11, %p1967_p8 }
 0x69d   : > { %1977 = shalt.err (!%p1974_p1)
}
 0x69e   : > { %1637 = dma.vmem_to_hbm [thread:$0]  (%p2644_p13), %s2523_s29, 128, %s2521_s20, %s1285_s10  }
 0x69f PF: > { %s2645_s12 = sld [smem:[#allocation21_spill]]  ;;  %s2646_s9 = sld [smem:[#allocation26_spill]] }
 0x6a0   : > { %s2647_s16 = sld [smem:[#allocation22_spill]] }
 0x6a5   : > { %s1310_s28 = sand.u32 1, %s2645_s12   ;;  %p2648_p6 = scmp.ne.s32.totalorder %s2646_s9, 0 }
 0x6a6   : > { %p2649_p5 = scmp.ge.s32.totalorder %s2647_s16, 2  ;;  %s1311_s13 = scalar_lea.sflag [#allocation5], %s1310_s28 }
 0x6a8   : > { %p1663_p2 = pnand %p2649_p5, %p2648_p6 }
 0x6aa   : > { %2011 = dma.done.wait (!%p1663_p2), %s1311_s13, 128  }
 0x6ab   : > { %2013 = vsyncadd (!%p1663_p2), %s1311_s13, 4294967168  ;;  %s2650_s20 = sld [smem:[#allocation23_spill]]  ;;  %s2651_s7 = sld [smem:[#allocation24_spill]] }
 0x6ac   : > { %s2652_s17 = smov %s2020_s18  ;;  %s2653_s18 = smov %s2024_s19 }
 0x6b1   : > { %p29_p4 = scmp.ge.s32.totalorder %s2650_s20, 4   ;;  %s2654_s19 = smov %s2651_s7 }
 0x6b3   :  { %31 = sbr.rel (!%p29_p4) target bundleno = 17 (0x11), region = 149 }
 0x6ba   :  { %1316 = vsyncpa [#allocation4], 1 }
 0x6bb   :  { %1318 = vsyncpa [#allocation4 + $0x1], 1 }
 0x6bc   :  { %1319 = vsyncpa [#allocation7], 1 }
 0x6bd   :  { %1321 = vsyncpa [#allocation7 + $0x1], 1 }
 0x6be   :  { %1322 = vsyncpa [#allocation10], 1 }
 0x6bf   :  { %1323 = vsyncpa [#allocation13], 1 }
 0x6c0   :  { %1324 = vsyncpa [#allocation5], 1 }
 0x6c1   :  { %1326 = vsyncpa [#allocation5 + $0x1], 1 }

</bundles_post_ra>
